<compile_context>
chip_gen: v6e
topology: v6e:2x2x1
jax: 0.10.0
libtpu: 0.0.40
codegen_flags: <defaults>
</compile_context>

<pallas_src>
import functools

import jax
import jax.numpy as jnp
from jax.experimental import pallas as pl
from jax.experimental.pallas import tpu as pltpu


# ---------------------------------------------------------------------------
# Kernel
# ---------------------------------------------------------------------------
def _rmsnorm_kernel(x_ref, w_ref, o_ref, *, eps):
    # f32 variance / rsqrt, cast back to input dtype, multiply by bf16 weight
    # (identical op order & dtypes to the PyTorch module, so rounding matches).
    x = x_ref[...].astype(jnp.float32)
    var = jnp.mean(x * x, axis=-1, keepdims=True)
    xn = x * jax.lax.rsqrt(var + eps)
    o_ref[...] = (w_ref[...] * xn.astype(x_ref.dtype)).astype(o_ref.dtype)


# ---------------------------------------------------------------------------
# Tiling / VMEM policy
# ---------------------------------------------------------------------------
def _vmem_budget():
    """Return (max_block_bytes, vmem_limit_bytes) for the current TPU generation.

    Peak VMEM is ~6-10x the block bytes (2x double-buffered bf16 input,
    2x double-buffered output, plus f32 intermediates for x, x*x, xn), so the
    block budget has to shrink on v7x's 64 MiB-per-TC VMEM.
    """
    try:
        vmem_phys = pltpu.get_tpu_info().vmem_capacity_bytes
    except Exception:  # interpret mode / older jax / non-TPU tracing
        vmem_phys = 0
    if vmem_phys >= 96 * 1024 * 1024:
        # v5e / v6e: 128 MiB physical VMEM, single TensorCore -> go big.
        return 8 * 1024 * 1024, 96 * 1024 * 1024
    # v7x (64 MiB per TC) or unknown: stay conservative.
    return 4 * 1024 * 1024, 48 * 1024 * 1024


def _pick_row_tile(rows, row_bytes, max_block_bytes):
    """Largest multiple-of-8 row tile whose (TM, H) block fits max_block_bytes.

    No divisor search: one masked partial trailing block (via pl.cdiv) is far
    cheaper than collapsing TM and multiplying the ~0.35 us/step grid overhead.
    Also caps TM at ceil(rows/2) (rounded up to a multiple of 8) so the grid
    has >= 2 steps and both v7x TensorCores get work.
    """
    if rows <= 8:
        return rows                              # full-extent block is always legal
    cap = max(8, max_block_bytes // max(row_bytes, 1))
    cap = (cap // 8) * 8
    half = -(-rows // 2)                         # ceil(rows / 2)
    half = ((half + 7) // 8) * 8                 # round up to sublane multiple
    return max(8, min(cap, half))


# ---------------------------------------------------------------------------
# Wrapper
# ---------------------------------------------------------------------------
def qwen2_rmsnorm(hidden_states, weight, eps=1e-6):
    """hidden_states: (..., H);  weight: (H,) bf16.  Returns same shape."""
    orig_shape = hidden_states.shape
    H = orig_shape[-1]
    x2d = hidden_states.reshape(-1, H)
    rows = x2d.shape[0]
    out_dtype = jnp.result_type(weight.dtype, hidden_states.dtype)

    max_block_bytes, vmem_limit = _vmem_budget()
    row_bytes = H * jnp.dtype(hidden_states.dtype).itemsize
    tm = _pick_row_tile(rows, row_bytes, max_block_bytes)
    grid = (pl.cdiv(rows, tm),)

    cost = pl.CostEstimate(
        flops=8 * rows * H,                      # square, mean, scale, weight mul
        transcendentals=rows,                    # one rsqrt per row
        bytes_accessed=(rows * H * jnp.dtype(hidden_states.dtype).itemsize
                        + rows * H * jnp.dtype(out_dtype).itemsize
                        + H * jnp.dtype(weight.dtype).itemsize),
    )

    out = pl.pallas_call(
        functools.partial(_rmsnorm_kernel, eps=eps),
        out_shape=jax.ShapeDtypeStruct((rows, H), out_dtype),
        grid=grid,
        in_specs=[
            pl.BlockSpec((tm, H), lambda i: (i, 0)),   # activation row tile, H never split
            pl.BlockSpec((1, H), lambda i: (0, 0)),    # weight, resident across all tiles
        ],
        out_specs=pl.BlockSpec((tm, H), lambda i: (i, 0)),
        compiler_params=pltpu.CompilerParams(
            dimension_semantics=("parallel",),         # rows independent -> megacore on v7x
            vmem_limit_bytes=vmem_limit,
        ),
        cost_estimate=cost,
    )(x2d, weight.reshape(1, H))
    return out.reshape(orig_shape)


# ---------------------------------------------------------------------------
if __name__ == "__main__":
    key = jax.random.PRNGKey(0)
    k_x, k_w, k_x2 = jax.random.split(key, 3)

    B, S, H = 2, 8, 128
    eps = 1e-6

    # (bs, qryLen, hidden_size) bf16 activations, bf16 weight (module default is ones;
    # perturb deterministically so the elementwise weight multiply is exercised).
    x = jax.random.normal(k_x, (B, S, H), dtype=jnp.float32).astype(jnp.bfloat16)
    w = (1.0 + 0.05 * jax.random.normal(k_w, (H,), dtype=jnp.float32)).astype(jnp.bfloat16)

    fwd = jax.jit(functools.partial(qwen2_rmsnorm, eps=eps))

    def ref(x, w, eps):
        xf = x.astype(jnp.float32)
        var = jnp.mean(xf * xf, axis=-1, keepdims=True)
        xn = xf * jax.lax.rsqrt(var + eps)
        return w * xn.astype(x.dtype)

    # Small shape (2 grid steps, exercises the megacore split path).
    y = fwd(x, w)
    jax.block_until_ready(y)
    assert y.shape == (B, S, H) and y.dtype == jnp.bfloat16
    assert jnp.allclose(y.astype(jnp.float32), ref(x, w, eps).astype(jnp.float32),
                        atol=1e-2, rtol=1e-2)

    # Awkward row count (rows = 3*179 = 537): multi-step grid with a masked
    # partial trailing block — previously this would have collapsed TM to 8.
    x2 = jax.random.normal(k_x2, (3, 179, H), dtype=jnp.float32).astype(jnp.bfloat16)
    y2 = fwd(x2, w)
    jax.block_until_ready(y2)
    assert y2.shape == (3, 179, H) and y2.dtype == jnp.bfloat16
    assert jnp.allclose(y2.astype(jnp.float32), ref(x2, w, eps).astype(jnp.float32),
                        atol=1e-2, rtol=1e-2)

    print("KERNEL_OK")
</pallas_src>

<mosaic_0001>
module attributes {stable_mosaic.version = 11 : i64} {
  func.func @_rmsnorm_kernel(%arg0: i32, %arg1: memref<8x128xbf16, #tpu.memory_space<vmem>>, %arg2: memref<1x128xbf16, #tpu.memory_space<vmem>>, %arg3: memref<8x128xbf16, #tpu.memory_space<vmem>>) attributes {dimension_semantics = [#tpu.dimension_semantics<parallel>], iteration_bounds = array<i64: 2>, scalar_prefetch = 0 : i64, scratch_operands = 0 : i64, tpu.core_type = #tpu.core_type<tc>, window_params = [{transform_indices = @transform_0, window_bounds = array<i64: 8, 128>}, {pipeline_mode = #tpu.pipeline_mode<synchronous>, transform_indices = @transform_1, window_bounds = array<i64: 1, 128>}, {transform_indices = @transform_2, window_bounds = array<i64: 8, 128>}]} {
    %c0 = arith.constant 0 : index
    %c0_0 = arith.constant 0 : index
    %0 = vector.load %arg1[%c0, %c0_0] : memref<8x128xbf16, #tpu.memory_space<vmem>>, vector<8x128xbf16>
    %1 = arith.extf %0 : vector<8x128xbf16> to vector<8x128xf32>
    %2 = arith.mulf %1, %1 : vector<8x128xf32>
    %cst = arith.constant dense<0.000000e+00> : vector<8xf32>
    %3 = vector.multi_reduction <add>, %2, %cst [1] : vector<8x128xf32> to vector<8xf32>
    %4 = vector.shape_cast %3 : vector<8xf32> to vector<8x1xf32>
    %cst_1 = arith.constant 1.280000e+02 : f32
    %5 = vector.broadcast %cst_1 : f32 to vector<8x1xf32>
    %6 = arith.divf %4, %5 : vector<8x1xf32>
    %cst_2 = arith.constant 9.99999997E-7 : f32
    %7 = vector.broadcast %cst_2 : f32 to vector<8x1xf32>
    %8 = arith.addf %6, %7 : vector<8x1xf32>
    %9 = math.rsqrt %8 : vector<8x1xf32>
    %10 = vector.broadcast %9 : vector<8x1xf32> to vector<8x128xf32>
    %11 = arith.mulf %1, %10 : vector<8x128xf32>
    %c0_3 = arith.constant 0 : index
    %c0_4 = arith.constant 0 : index
    %12 = vector.load %arg2[%c0_3, %c0_4] : memref<1x128xbf16, #tpu.memory_space<vmem>>, vector<1x128xbf16>
    %13 = arith.truncf %11 : vector<8x128xf32> to vector<8x128xbf16>
    %14 = vector.broadcast %12 : vector<1x128xbf16> to vector<8x128xbf16>
    %15 = arith.mulf %14, %13 : vector<8x128xbf16>
    %c0_5 = arith.constant 0 : index
    %c0_6 = arith.constant 0 : index
    %16 = vector.load %arg3[%c0_5, %c0_6] : memref<8x128xbf16, #tpu.memory_space<vmem>>, vector<8x128xbf16>
    tpu.vector_store %arg3[%c0_5, %c0_6], %15 {strides = array<i32>} : memref<8x128xbf16, #tpu.memory_space<vmem>>, vector<8x128xbf16>,
    return
  }
  func.func @transform_0(%arg0: i32) -> (i32, i32) {
    %c0_i32 = arith.constant 0 : i32
    %c0_i32_0 = arith.constant 0 : i32
    return %arg0, %c0_i32 : i32, i32
  }
  func.func @transform_1(%arg0: i32) -> (i32, i32) {
    %c0_i32 = arith.constant 0 : i32
    %c0_i32_0 = arith.constant 0 : i32
    %c0_i32_1 = arith.constant 0 : i32
    return %c0_i32, %c0_i32_0 : i32, i32
  }
  func.func @transform_2(%arg0: i32) -> (i32, i32) {
    %c0_i32 = arith.constant 0 : i32
    %c0_i32_0 = arith.constant 0 : i32
    return %arg0, %c0_i32 : i32, i32
  }
}

</mosaic_0001>

<bundles_post_ra>
// kernel: qwen2_rmsnorm.1
= control target key start
LH: loop header
LB: loop body
LE: loop exit
PB: predicated region body
PF: predicated region fallthrough
CT: control target
= control target key end

     0   :  { %7 = vsyncpa [#allocation3], 0  ;;  %s579_s0 = inlined_call_operand.hbm [shape: bf16[16,128], index: 0, kind: input, shape index: {}]   ;;  %s580_s1 = inlined_call_operand.vmem [shape: bf16[1,128], index: 1, kind: input, shape index: {}]   ;;  %s581_s2 = inlined_call_operand.hbm [shape: bf16[16,128], index: 2, kind: output, shape index: {}]  }
   0x1   :  { %9 = vsyncpa [#allocation3 + $0x1], 0 }
   0x2   :  { %10 = vsyncpa [#allocation4], 0 }
   0x3   :  { %12 = vsyncpa [#allocation4 + $0x1], 0  ;;  %s435_s9 = smov 0   ;;  %s437_s10 = smov 0  }
   0x4   :  { %s439_s11 = smov 0   ;;  %s441_s12 = smov 0  }
   0x5 LB: > { %s456_s13 = sadd.s32 4294967295, %s416_s12   ;;  %s264_s14 = sadd.s32 4294967294, %s416_s12   ;;  %s416_s12 = sphi %s441_s12, %s598_s12   ;;  %s412_s11 = sphi %s439_s11, %s597_s11   ;;  %s408_s10 = sphi %s437_s10, %s596_s10   ;;  %s404_s9 = sphi %s435_s9, %s595_s9  }
   0x6   : > { %s460_s15 = sadd.s32 1, %s416_s12   ;;  %s25_s16 = sadd.s32 1, %s412_s11 }
   0x7   : > { %s22_s17 = ssub.s32 %s416_s12, %s460_s15  ;;  %p32_p0 = scmp.ne.s32.totalorder %s412_s11, %s408_s10 }
   0x8   : > { %p23_p1 = scmp.eq.s32.totalorder %s22_s17, 0  ;;  %p33_p2 = scmp.eq.s32.totalorder %s416_s12, 0 }
   0x9   : > { %p38_p3 = scmp.ne.s32.totalorder %s408_s10, %s404_s9  ;;  %p39_p4 = scmp.eq.s32.totalorder %s456_s13, 0 }
   0xa   : > { %s472_s18 = scalar_select %p23_p1, %s412_s11, %s25_s16  }
   0xb   : > { %p474_p5 = por %p33_p2, %p32_p0  ;;  %p478_p6 = por %p39_p4, %p38_p3 }
   0xc   : > { %p83_p7 = scmp.eq.s32.totalorder %s456_s13, 1  ;;  %p89_p8 = scmp.eq.s32.totalorder %s264_s14, 1 }
   0xd   : > { %s585_s20 = scalar_select %p478_p6, 1, 0 }
   0xe   : > { %p288_p10 = scmp.lt.s32.totalorder %s416_s12, 2  ;;  %p485_p11 = por %p83_p7, %p32_p0 }
   0xf   : > { %p489_p12 = por %p89_p8, %p38_p3  ;;  %s112_s23 = sand.u32 1, %s412_s11  }
  0x10   : > { %s586_s21 = scalar_select %p485_p11, 1, 0 }
  0x11   : > { %s587_s22 = scalar_select %p489_p12, 1, 0 }
  0x12   : > { %s268_s24 = sshll.u32 %s416_s12, 6  ;;  %s267_s25 = sshll.u32 %s112_s23, 2 }
  0x13   : > { %s498_s28 = scalar_lea.hbm %s579_s0, %s268_s24  ;;  %s116_s29 = scalar_lea.vmem [#allocation2], %s267_s25 }
  0x14   : > { %s123_s30 = sshll.u32 %s116_s29, 4  ;;  %p502_p13 = pnand %p288_p10, %p474_p5  ;;  %s506_s30 = int_to_ptr.vmem [resolvable:$true] %s123_s30 }
  0x15   : > { %s113_s4 = scalar_lea.sflag [#allocation3], %s112_s23  ;;  %s324_s5 = scalar_lea.hbm %s498_s28, 64 }
  0x16   : > { %p325_p2 = scmp.ne.s32.totalorder %s498_s28, %s324_s5  ;;  %p326_p3 = pneg %p502_p13 }
  0x17   : > { %s329_s8 = scalar_lea.hbm %s579_s0, 128  ;;  %p330_p5 = scmp.lt.s32.totalorder %s498_s28, %s579_s0 }
  0x18   : > { %p327_p4 = pnand %p326_p3, %p325_p2  ;;  %p331_p8 = scmp.lt.s32.totalorder %s329_s8, %s324_s5 }
  0x1a   : > { %p328_p7 = pneg %p327_p4  ;;  %p332_p10 = por %p331_p8, %p330_p5 }
  0x1c   : > { %p333_p9 = pnand %p332_p10, %p328_p7 }
  0x1e   : > { %336 = shalt.err (!%p333_p9)
}
  0x1f   : > { %s337_s17 = scalar_lea.vmem %s506_s30, 64  ;;  %s418_s19 = smov [#allocation2]  }
  0x20   : > { %p338_p0 = scmp.ne.s32.totalorder %s506_s30, %s337_s17  ;;  %s342_s23 = sshll.u32 %s418_s19, 4  ;;  %s343_s23 = int_to_ptr.vmem [resolvable:$false] %s342_s23 }
  0x21   : > { %s344_s24 = scalar_lea.vmem %s343_s23, 128  ;;  %p345_p4 = scmp.lt.s32.totalorder %s506_s30, %s343_s23 }
  0x22   : > { %p340_p1 = pnand %p338_p0, %p326_p3  ;;  %p346_p12 = scmp.lt.s32.totalorder %s344_s24, %s337_s17 }
  0x24   : > { %p341_p2 = pneg %p340_p1  ;;  %p347_p11 = por %p346_p12, %p345_p4 }
  0x26   : > { %p348_p6 = pnand %p347_p11, %p341_p2 }
  0x28   : > { %351 = shalt.err (!%p348_p6)
}
  0x29   : > { %283 = dma.hbm_to_vmem [thread:$0]  (!%p502_p13), %s498_s28, 64, %s506_s30, %s113_s4  }
  0x2a   : > { %p589_p9 = scmp.lt.s32.totalorder %s416_s12, 3  ;;  %p590_p7 = scmp.ge.s32.totalorder %s416_s12, 1 }
  0x2c   : > { %p129_p0 = pnand %p590_p7, %p589_p9 }
  0x2d   : > { %s533_s25 = sand.u32 (!%p129_p0), 1, %s408_s10   ;;  %p591_p6 = scmp.ne.s32.totalorder (!%p129_p0), %s585_s20, 0 }
  0x2e   : > { %132 = sbr.rel (%p129_p0) target bundleno = 232 (0xe8), region = 28  ;;  %s270_s26 = sshll.u32 (!%p129_p0), %s533_s25, 2 }
  0x2f   : > { %s135_s27 = scalar_lea.sflag (!%p129_p0), [#allocation3], %s533_s25  ;;  %s138_s29 = scalar_lea.vmem (!%p129_p0), [#allocation2], %s270_s26 }
  0x33   : > { %395 = dma.done.wait (%p591_p6), %s135_s27, 64  }
  0x34   : > { %397 = vsyncadd (%p591_p6), %s135_s27, 4294967232  ;;  %v159_v0 = vld [vmem:[%s138_s29] sm:$0xf]  ;;  %v174_v6 = vlaneseq  ;;  %s273_s20 = sshll.u32 %s456_s13, 6  ;;  %s158_s3 = scalar_lea.vmem [#allocation5], %s270_s26 }
  0x35   : > { %v160_v1 = vunpack.c.l.bf16 %v159_v0  ;;  %v169_v8 = vld [vmem:[%s580_s1] sm:$0x1]  ;;  %s194_s4 = sshll.u32 %s158_s3, 4  ;;  %s192_s7 = scalar_lea.hbm %s581_s2, %s273_s20  ;;  %s195_s4 = int_to_ptr.vmem [resolvable:$true] %s194_s4 }
  0x36   : > { %v175_v7 = vshrl.u32 %v174_v6, 7  ;;  %v172_v9 = vpack.i.b16 %v169_v8, %v169_v8  ;;  %s181_s8 = scalar_lea.sflag [#allocation4], %s533_s25  ;;  %s352_s14 = scalar_lea.vmem %s195_s4, 64 }
  0x37   : > { %v161_v2 = vmul.f32 %v160_v1, %v160_v1  ;;  %p353_p11 = scmp.ne.s32.totalorder %s195_s4, %s352_s14  ;;  %p592_p12 = scmp.ne.s32.totalorder %s586_s21, 0 }
  0x38   : > { %v176_v10 = vsub.s32 0, %v175_v7  ;;  %s419_s16 = smov [#allocation5]  }
  0x39   : > { %162 = vadd.xlane.f32.xlu0 %v161_v2  ;;  %p354_p13 = pnand %p353_p11, %p592_p12  ;;  %s356_s17 = sshll.u32 %s419_s16, 4  ;;  %s357_s17 = int_to_ptr.vmem [resolvable:$false] %s356_s17 }
  0x3a   : > { %v177_v13 = vrot.slane %v172_v9, %v176_v10  ;;  %s358_s13 = scalar_lea.vmem %s357_s17, 128  ;;  %p359_p3 = scmp.lt.s32.totalorder %s195_s4, %s357_s17 }
  0x3b   : > { %p355_p1 = pneg %p354_p13  ;;  %p360_p5 = scmp.lt.s32.totalorder %s358_s13, %s352_s14 }
  0x3d   : > { %p361_p8 = por %p360_p5, %p359_p3 }
  0x3f   : > { %p362_p10 = pnand %p361_p8, %p355_p1 }
  0xc2   : > { %v163_v3 = vpop.xlane.xlu0 %162 }
  0xc3   : > { %v165_v4 = vmul.f32 0.0078125, %v163_v3 }
  0xc5   : > { %v166_v5 = vadd.f32 1e-06, %v165_v4 }
  0xc7   : > { %322 = vrsqrt.f32 %v166_v5 }
  0xd4   : > { %v323_v11 = vpop.eup %322 }
  0xd5   : > { %v168_v12 = vmul.f32 %v323_v11, %v160_v1 }
  0xd7   : > { %v170_v14 = vpack.c.bf16 %v168_v12, %v168_v12 }
  0xd9   : > { %v178_v15 = vmul.bf16 %v177_v13, %v170_v14 }
  0xdb   : > { %179 = vst [vmem:[%s158_s3] sm:$0xf] %v178_v15 }
  0xdc   : > { %365 = shalt.err (!%p362_p10)
}
  0xdd   : > { %s366_s19 = scalar_lea.hbm %s192_s7, 64  ;;  %s370_s25 = scalar_lea.hbm %s581_s2, 128 }
  0xde   : > { %p367_p2 = scmp.ne.s32.totalorder %s192_s7, %s366_s19  ;;  %p371_p7 = scmp.lt.s32.totalorder %s192_s7, %s581_s2 }
  0xdf   : > { %p372_p0 = scmp.lt.s32.totalorder %s370_s25, %s366_s19 }
  0xe0   : > { %p368_p4 = pnand %p367_p2, %p592_p12 }
  0xe1   : > { %p373_p6 = por %p372_p0, %p371_p7 }
  0xe2   : > { %p369_p9 = pneg %p368_p4 }
  0xe4   : > { %p374_p11 = pnand %p373_p6, %p369_p9 }
  0xe6   : > { %377 = shalt.err (!%p374_p11)
}
  0xe7   : > { %278 = dma.vmem_to_hbm [thread:$0]  (%p592_p12), %s195_s4, 64, %s192_s7, %s181_s8  }
  0xe8 PF: > { %s206_s29 = sand.u32 1, %s404_s9   ;;  %p593_p13 = scmp.ne.s32.totalorder %s587_s22, 0 }
  0xe9   : > { %p594_p1 = scmp.ge.s32.totalorder %s416_s12, 2  ;;  %s207_s28 = scalar_lea.sflag [#allocation4], %s206_s29 }
  0xeb   : > { %p285_p3 = pnand %p594_p1, %p593_p13 }
  0xed   : > { %p286_p5 = pneg %p285_p3 }
  0xef   : > { %399 = dma.done.wait (%p286_p5), %s207_s28, 64  }
  0xf0   : > { %401 = vsyncadd (%p286_p5), %s207_s28, 4294967232  ;;  %p15_p8 = scmp.ge.s32.totalorder %s460_s15, 4   ;;  %s595_s9 = smov %s408_s10 }
  0xf1   : > { %s596_s10 = smov %s412_s11  ;;  %s597_s11 = smov %s472_s18 }
  0xf2   : > { %s598_s12 = smov %s460_s15  ;;  %17 = sbr.rel (!%p15_p8) target bundleno = 5 (0x5), region = 73 }
  0xf7   :  { %212 = vsyncpa [#allocation3], 1 }
  0xf8   :  { %214 = vsyncpa [#allocation3 + $0x1], 1 }
  0xf9   :  { %215 = vsyncpa [#allocation4], 1 }
  0xfa   :  { %217 = vsyncpa [#allocation4 + $0x1], 1 }

</bundles_post_ra>
